<compile_context>
chip_gen: v5e
topology: v5e:2x2
jax: 0.10.0
libtpu: 0.0.40
codegen_flags: <defaults>
</compile_context>

<pallas_src>
import math

import jax
import jax.numpy as jnp
from jax.experimental import pallas as pl
from jax.experimental.pallas import tpu as pltpu

_SQRT_2_OVER_PI = math.sqrt(2.0 / math.pi)
# Widest lane width first.
_LANE_CANDIDATES = (4096, 2048, 1024, 512, 256, 128)


def _gelu_math(xf):
    inner = _SQRT_2_OVER_PI * (xf + 0.044715 * (xf * xf * xf))
    return 0.5 * xf * (1.0 + jnp.tanh(inner))


def _gelu_kernel(x_ref, o_ref):
    xf = x_ref[...].astype(jnp.float32)
    o_ref[...] = _gelu_math(xf).astype(o_ref.dtype)


def _budgets():
    """Generation-aware (block_byte_budget, vmem_limit_bytes)."""
    try:
        cap = pltpu.get_tpu_info().vmem_capacity_bytes
    except Exception:
        cap = 64 * 1024 * 1024  # conservative fallback (v7x-sized)
    if cap >= 96 * 1024 * 1024:  # v5e / v6e: 128 MiB physical VMEM
        return 8 * 1024 * 1024, 64 * 1024 * 1024
    # v7x: 64 MiB physical per TensorCore.
    return 8 * 1024 * 1024, 44 * 1024 * 1024


def _pick_lanes(n):
    # Prefer the widest lane width that still leaves >= 8 rows (sublanes).
    for cand in _LANE_CANDIDATES:
        if n % cand == 0 and n // cand >= 8:
            return cand
    for cand in _LANE_CANDIDATES:
        if n % cand == 0:
            return cand
    return None  # element count not a multiple of 128


def _pick_tm(rows, lanes, itemsize, block_budget):
    tm = min(max(32, (block_budget // (lanes * itemsize)) // 32 * 32), rows)
    # Round to a multiple of 32 (covers bf16 / int8 / fp8 sublane packing).
    if rows >= 32:
        tm = max(32, tm // 32 * 32)
    elif rows >= 8:
        tm = max(8, tm // 8 * 8)
    # else: tm == rows (block == full dim satisfies the (8,128) rule)

    # Keep the grid >= 2 when possible so v7x's two TensorCores both stream.
    if rows >= 64 and pl.cdiv(rows, tm) == 1:
        tm = min(rows, ((rows + 1) // 2 + 31) // 32 * 32)

    # When cheap, pick a tm that divides rows (avoids a ragged masked block).
    if tm >= 32 and rows % tm != 0:
        for cand in range(tm, max(31, tm - 16 * 32), -32):
            if rows % cand == 0:
                tm = cand
                break
    return tm


def _run_gelu_2d(x2, *, block_budget, vmem_limit, donate):
    rows, lanes = x2.shape
    itemsize = jnp.dtype(x2.dtype).itemsize
    tm = _pick_tm(rows, lanes, itemsize, block_budget)
    grid = (pl.cdiv(rows, tm),)
    n = rows * lanes
    extra = {"input_output_aliases": {0: 0}} if donate else {}
    return pl.pallas_call(
        _gelu_kernel,
        out_shape=jax.ShapeDtypeStruct((rows, lanes), x2.dtype),
        grid=grid,
        in_specs=[pl.BlockSpec((tm, lanes), lambda i: (i, 0))],
        out_specs=pl.BlockSpec((tm, lanes), lambda i: (i, 0)),
        compiler_params=pltpu.CompilerParams(
            dimension_semantics=("parallel",),
            vmem_limit_bytes=vmem_limit,
        ),
        cost_estimate=pl.CostEstimate(
            flops=8 * n,
            transcendentals=n,
            bytes_accessed=2 * n * itemsize,
        ),
        **extra,
    )(x2)


def gelu(x, *, donate_input=False):
    """Elementwise tanh-GELU computed by a lane-dense Pallas TPU kernel."""
    # TODO(synk): when this GELU follows a matmul (typical MLP), fuse it into
    # that kernel's epilogue instead of calling this standalone streaming op.
    orig_shape = x.shape
    n = x.size
    if n == 0:
        return x

    block_budget, vmem_limit = _budgets()
    flat = x.reshape(-1)

    lanes = _pick_lanes(n)
    if lanes is not None:
        rows = n // lanes
        out2 = _run_gelu_2d(
            flat.reshape(rows, lanes),
            block_budget=block_budget,
            vmem_limit=vmem_limit,
            donate=donate_input,
        )
        return out2.reshape(orig_shape)

    # Rare path: element count not a multiple of 128. Run the kernel on the
    # contiguous 128-aligned prefix; handle the <=127-element tail with plain
    # jnp (no full-tensor pad + slice round trips).
    prefix = (n // 128) * 128
    tail = _gelu_math(flat[prefix:].astype(jnp.float32)).astype(x.dtype)
    if prefix == 0:
        return tail.reshape(orig_shape)
    lanes = _pick_lanes(prefix)
    rows = prefix // lanes
    head = _run_gelu_2d(
        flat[:prefix].reshape(rows, lanes),
        block_budget=block_budget,
        vmem_limit=vmem_limit,
        donate=False,
    )
    return jnp.concatenate([head.reshape(-1), tail]).reshape(orig_shape)


def _gelu_ref(x):
    return _gelu_math(x.astype(jnp.float32)).astype(x.dtype)


if __name__ == "__main__":
    # Primary check: transformer-activation-like shape (batch, seq, hidden).
    x = jax.random.normal(jax.random.PRNGKey(0), (2, 8, 32), dtype=jnp.float32)
    y = gelu(x)
    jax.block_until_ready(y)
    assert y.shape == x.shape and y.dtype == x.dtype
    assert jnp.allclose(y, _gelu_ref(x), atol=1e-5, rtol=1e-5), "f32 mismatch"

    # bf16 path (exercises the multiple-of-32 sublane rounding, f32 compute).
    x_bf = jax.random.normal(jax.random.PRNGKey(2), (2, 8, 128), dtype=jnp.bfloat16)
    y_bf = gelu(x_bf)
    jax.block_until_ready(y_bf)
    assert y_bf.dtype == jnp.bfloat16
    assert jnp.allclose(
        y_bf.astype(jnp.float32), _gelu_ref(x_bf).astype(jnp.float32),
        atol=2e-2, rtol=2e-2,
    ), "bf16 mismatch"

    # Prefix + tail stitch path (>=128 elements, not a multiple of 128).
    x_mix = jax.random.normal(jax.random.PRNGKey(3), (2, 70), dtype=jnp.float32)
    y_mix = gelu(x_mix)
    jax.block_until_ready(y_mix)
    assert jnp.allclose(y_mix, _gelu_ref(x_mix), atol=1e-5, rtol=1e-5), "prefix/tail mismatch"

    # Tiny non-multiple-of-128 tensor (pure-jnp tail path).
    x_odd = jax.random.normal(jax.random.PRNGKey(1), (3, 5, 7), dtype=jnp.float32)
    y_odd = gelu(x_odd)
    jax.block_until_ready(y_odd)
    assert jnp.allclose(y_odd, _gelu_ref(x_odd), atol=1e-5, rtol=1e-5), "odd-shape mismatch"

    print("KERNEL_OK")
</pallas_src>

<mosaic_0001>
module attributes {stable_mosaic.version = 11 : i64} {
  func.func @_gelu_kernel(%arg0: i32, %arg1: memref<1x512xf32, #tpu.memory_space<vmem>>, %arg2: memref<1x512xf32, #tpu.memory_space<vmem>>) attributes {dimension_semantics = [#tpu.dimension_semantics<parallel>], iteration_bounds = array<i64: 1>, scalar_prefetch = 0 : i64, scratch_operands = 0 : i64, tpu.core_type = #tpu.core_type<tc>, window_params = [{transform_indices = @transform_0, window_bounds = array<i64: 1, 512>}, {transform_indices = @transform_1, window_bounds = array<i64: 1, 512>}]} {
    %c0 = arith.constant 0 : index
    %c0_0 = arith.constant 0 : index
    %0 = vector.load %arg1[%c0, %c0_0] : memref<1x512xf32, #tpu.memory_space<vmem>>, vector<1x512xf32>
    %1 = arith.mulf %0, %0 : vector<1x512xf32>
    %2 = arith.mulf %1, %0 : vector<1x512xf32>
    %cst = arith.constant 4.471500e-02 : f32
    %3 = vector.broadcast %cst : f32 to vector<1x512xf32>
    %4 = arith.mulf %3, %2 : vector<1x512xf32>
    %5 = arith.addf %0, %4 : vector<1x512xf32>
    %cst_1 = arith.constant 0.797884583 : f32
    %6 = vector.broadcast %cst_1 : f32 to vector<1x512xf32>
    %7 = arith.mulf %6, %5 : vector<1x512xf32>
    %cst_2 = arith.constant 5.000000e-01 : f32
    %8 = vector.broadcast %cst_2 : f32 to vector<1x512xf32>
    %9 = arith.mulf %8, %0 : vector<1x512xf32>
    %10 = math.tanh %7 : vector<1x512xf32>
    %cst_3 = arith.constant 1.000000e+00 : f32
    %11 = vector.broadcast %cst_3 : f32 to vector<1x512xf32>
    %12 = arith.addf %11, %10 : vector<1x512xf32>
    %13 = arith.mulf %9, %12 : vector<1x512xf32>
    %c0_4 = arith.constant 0 : index
    %c0_5 = arith.constant 0 : index
    %14 = vector.load %arg2[%c0_4, %c0_5] : memref<1x512xf32, #tpu.memory_space<vmem>>, vector<1x512xf32>
    tpu.vector_store %arg2[%c0_4, %c0_5], %13 {strides = array<i32>} : memref<1x512xf32, #tpu.memory_space<vmem>>, vector<1x512xf32>,
    return
  }
  func.func @transform_0(%arg0: i32) -> (i32, i32) {
    %c0_i32 = arith.constant 0 : i32
    %c0_i32_0 = arith.constant 0 : i32
    return %arg0, %c0_i32 : i32, i32
  }
  func.func @transform_1(%arg0: i32) -> (i32, i32) {
    %c0_i32 = arith.constant 0 : i32
    %c0_i32_0 = arith.constant 0 : i32
    return %arg0, %c0_i32 : i32, i32
  }
}

</mosaic_0001>

<bundles_post_ra>
// kernel: tpu_custom_call.1
= control target key start
LH: loop header
LB: loop body
LE: loop exit
PB: predicated region body
PF: predicated region fallthrough
CT: control target
= control target key end

     0   :  { %6 = vsyncpa [#allocation3], 0  ;;  %s129_s0 = inlined_call_operand.hbm [shape: f32[1,512], index: 0, kind: input, shape index: {}]   ;;  %s130_s1 = inlined_call_operand.hbm [shape: f32[1,512], index: 1, kind: output, shape index: {}]  }
   0x1   :  { %7 = vsyncpa [#allocation4], 0  ;;  %s13_s8 = sshll.u32 %s129_s0, 4  ;;  %s111_s9 = smov [#allocation2]   ;;  %s14_s8 = int_to_ptr.hbm [resolvable:$true] %s13_s8 }
   0x2   :  { %s15_s10 = sshll.u32 %s111_s9, 4  ;;  %s16_s10 = int_to_ptr.vmem [resolvable:$true] %s15_s10 }
   0x3   :  { %18 = dma.hbm_to_vmem [thread:$0]  %s14_s8, 64, %s16_s10, [#allocation3]  }
   0x4   :  { %107 = dma.done.wait [#allocation3], 64  }
   0x5   :  { %108 = vsyncadd [#allocation3], 4294967232  ;;  %v23_v0 = vld [vmem:[#allocation2] sm:$0xf]  ;;  %v33_v6 = vlaneseq  ;;  %s112_s11 = smov [#allocation5]   ;;  %s45_s14 = sshll.u32 %s130_s1, 4  ;;  %s46_s14 = int_to_ptr.hbm [resolvable:$true] %s45_s14 }
   0x6   :  { %v24_v1 = vmul.f32 %v23_v0, %v23_v0  ;;  %v29_v7 = vmul.f32 0.5, %v23_v0  ;;  %s43_s12 = sshll.u32 %s112_s11, 4  ;;  %s44_s12 = int_to_ptr.vmem [resolvable:$true] %s43_s12 }
   0x7   :  { %vm35_vm0 = vcmp.lt.s32.totalorder %v33_v6, 512 }
   0x8   :  { %v25_v2 = vmul.f32 %v24_v1, %v23_v0 }
   0xa   :  { %v26_v3 = vmul.f32 0.044715, %v25_v2 }
   0xc   :  { %v27_v4 = vadd.f32 %v26_v3, %v23_v0 }
   0xe   :  { %v28_v5 = vmul.f32 0.7978846, %v27_v4 }
  0x10   :  { %57 = vtanh.f32 %v28_v5 }
  0x16   :  { %v58_v8 = vpop.eup %57 }
  0x17   :  { %v31_v9 = vadd.f32 1.0, %v58_v8 }
  0x19   :  { %v32_v10 = vmul.f32 %v31_v9, %v29_v7 }
  0x1b   :  { %37 = vst.msk [vmem:[#allocation5] sm:$0xf] %vm35_vm0, %v32_v10 }
  0x1c   :  { %48 = dma.vmem_to_hbm [thread:$0]  %s44_s12, 64, %s46_s14, [#allocation4]  }
  0x1d   :  { %109 = dma.done.wait [#allocation4], 64  }
  0x1e   :  { %110 = vsyncadd [#allocation4], 4294967232 }
  0x1f   :  { %53 = vsyncpa [#allocation3], 1 }
  0x20   :  { %54 = vsyncpa [#allocation4], 1 }

</bundles_post_ra>
